<compile_context>
chip_gen: v6e
topology: v6e:2x2x1
jax: 0.10.0
libtpu: 0.0.40
codegen_flags: <defaults>
</compile_context>

<pallas_src>
import functools

import jax
import jax.numpy as jnp
from jax.experimental import pallas as pl
from jax.experimental.pallas import tpu as pltpu

BN_EPS = 1e-5
LANE = 128
SUBLANE = 8


def outside_state_kernel(xc_ref, wcat_ref, g1_ref, beta1_ref,
                         w2_ref, g2_ref, beta2_ref,
                         w3_ref, b3_ref, out_ref, *, real_b):
    bp = xc_ref.shape[0]                 # static padded batch rows
    inv_b = 1.0 / real_b                 # BN stats use the REAL batch size
    need_row_mask = bp != real_b
    if need_row_mask:
        row_mask = (jax.lax.broadcasted_iota(jnp.int32, (bp, 1), 0)
                    < real_b).astype(jnp.float32)

    # --- fc1 (embedding + goal fused into ONE matmul; pre-BN bias dropped) ---
    h = jnp.dot(xc_ref[...], wcat_ref[...], preferred_element_type=jnp.float32)

    # --- bn1 (training-mode batch stats, one pass) + ReLU -------------------
    mu = jnp.sum(h, axis=0, keepdims=True) * inv_b
    var = jnp.maximum(jnp.sum(h * h, axis=0, keepdims=True) * inv_b - mu * mu, 0.0)
    s = g1_ref[...] * jax.lax.rsqrt(var + BN_EPS)
    t = beta1_ref[...] - mu * s
    h = jnp.maximum(h * s + t, 0.0)
    if need_row_mask:
        h = h * row_mask                 # keep padded rows exactly zero

    # --- fc2 (bias dropped) + bn2 + ReLU ------------------------------------
    h = jnp.dot(h.astype(jnp.bfloat16), w2_ref[...],
                preferred_element_type=jnp.float32)
    mu = jnp.sum(h, axis=0, keepdims=True) * inv_b
    var = jnp.maximum(jnp.sum(h * h, axis=0, keepdims=True) * inv_b - mu * mu, 0.0)
    s = g2_ref[...] * jax.lax.rsqrt(var + BN_EPS)
    t = beta2_ref[...] - mu * s
    h = jnp.maximum(h * s + t, 0.0)
    if need_row_mask:
        h = h * row_mask

    # --- fc3 (bias kept; lane-dense padded output, real cols sliced later) --
    out_ref[...] = (jnp.dot(h.astype(jnp.bfloat16), w3_ref[...],
                            preferred_element_type=jnp.float32)
                    + b3_ref[...])


def _round_up(n, m):
    return ((n + m - 1) // m) * m


def _pad_last(a, n, value=0.0):
    pad = n - a.shape[-1]
    if pad == 0:
        return a
    cfg = [(0, 0)] * (a.ndim - 1) + [(0, pad)]
    return jnp.pad(a, cfg, constant_values=value)


def _pad_first(a, n, value=0.0):
    pad = n - a.shape[0]
    if pad == 0:
        return a
    cfg = [(0, pad)] + [(0, 0)] * (a.ndim - 1)
    return jnp.pad(a, cfg, constant_values=value)


def init_params(key, output_dim, hidden_dim, state_dim, vocab_size, embed_size=16):
    ks = jax.random.split(key, 8)
    gdim = output_dim * state_dim
    scale = 0.1
    return {
        "we":    scale * jax.random.normal(ks[0], (vocab_size, embed_size), jnp.float32),
        "w1e":   scale * jax.random.normal(ks[1], (embed_size, hidden_dim), jnp.float32),
        "w1g":   scale * jax.random.normal(ks[2], (gdim, hidden_dim), jnp.float32),
        "b1":    scale * jax.random.normal(ks[3], (1, hidden_dim), jnp.float32),
        "g1":    jnp.ones((1, hidden_dim), jnp.float32),
        "beta1": jnp.zeros((1, hidden_dim), jnp.float32),
        "w2":    scale * jax.random.normal(ks[4], (hidden_dim, hidden_dim), jnp.float32),
        "b2":    scale * jax.random.normal(ks[5], (1, hidden_dim), jnp.float32),
        "g2":    jnp.ones((1, hidden_dim), jnp.float32),
        "beta2": jnp.zeros((1, hidden_dim), jnp.float32),
        "w3":    scale * jax.random.normal(ks[6], (hidden_dim, gdim), jnp.float32),
        "b3":    scale * jax.random.normal(ks[7], (1, gdim), jnp.float32),
    }


def prepare_params(params, vocab_size):
    """One-time prep: fuse embedding into fc1, stack [We@W1e ; W1g] into a
    single fc1 weight, cast matmul weights to bf16, zero-pad all feature (lane)
    dims to multiples of 128.  b1/b2 intentionally dropped (cancelled exactly
    by training-mode BatchNorm)."""
    hidden_dim = params["w2"].shape[0]
    gdim = params["w3"].shape[1]
    hp = _round_up(hidden_dim, LANE)
    gp = _round_up(gdim, LANE)
    in_dim = vocab_size + gdim
    in_pad = _round_up(in_dim, LANE)

    w_fused = jnp.dot(params["we"], params["w1e"])          # (vocab, hidden) f32
    w_cat = jnp.concatenate([w_fused, params["w1g"]], axis=0)  # (vocab+gdim, hidden)
    return {
        "wcat":  _pad_last(_pad_first(w_cat, in_pad), hp).astype(jnp.bfloat16),
        "g1":    _pad_last(params["g1"], hp, value=1.0),
        "beta1": _pad_last(params["beta1"], hp),
        "w2":    _pad_last(_pad_first(params["w2"], hp), hp).astype(jnp.bfloat16),
        "g2":    _pad_last(params["g2"], hp, value=1.0),
        "beta2": _pad_last(params["beta2"], hp),
        "w3":    _pad_last(_pad_first(params["w3"], hp), gp).astype(jnp.bfloat16),
        "b3":    _pad_last(params["b3"], gp),
    }


@functools.partial(jax.jit, static_argnames=("output_dim", "state_dim"))
def outside_state_forward(pp, one_hot_input, goal_states, *, output_dim, state_dim):
    """one_hot_input: (B, vocab) or (G, B, vocab); goal_states: (B, S) or (G, B, S).
    A leading G axis = independent batches processed as a grid with VMEM-resident
    weights (each grid step has its own training-BN statistics)."""
    squeeze_group = one_hot_input.ndim == 2
    if squeeze_group:
        one_hot_input = one_hot_input[None]
        goal_states = goal_states[None]
    G, B, V = one_hot_input.shape
    gdim = output_dim * state_dim

    in_pad = pp["wcat"].shape[0]
    gp = pp["b3"].shape[-1]
    Bp = _round_up(max(B, SUBLANE), SUBLANE)   # pad rows to f32 sublane multiple

    # Fused lane-dense fc1 operand: [one_hot(input) | one_hot(goal)] -> (G,Bp,in_pad)
    goal_flat = jax.nn.one_hot(goal_states, output_dim,
                               dtype=jnp.float32).reshape(G, B, gdim)
    xc = jnp.concatenate([one_hot_input.astype(jnp.float32), goal_flat], axis=-1)
    xc = jnp.pad(xc, ((0, 0), (0, Bp - B), (0, in_pad - (V + gdim))))
    xc = xc.astype(jnp.bfloat16)

    kernel = functools.partial(outside_state_kernel, real_b=B)

    grid_spec = pltpu.PrefetchScalarGridSpec(
        num_scalar_prefetch=0,
        grid=(G,),
        in_specs=[
            pl.BlockSpec((None, Bp, in_pad), lambda g: (g, 0, 0)),   # per-group input
            # Weights: constant block index -> DMA'd once, VMEM-resident across grid.
            pl.BlockSpec(pp["wcat"].shape,  lambda g: (0, 0)),
            pl.BlockSpec(pp["g1"].shape,    lambda g: (0, 0)),
            pl.BlockSpec(pp["beta1"].shape, lambda g: (0, 0)),
            pl.BlockSpec(pp["w2"].shape,    lambda g: (0, 0)),
            pl.BlockSpec(pp["g2"].shape,    lambda g: (0, 0)),
            pl.BlockSpec(pp["beta2"].shape, lambda g: (0, 0)),
            pl.BlockSpec(pp["w3"].shape,    lambda g: (0, 0)),
            pl.BlockSpec(pp["b3"].shape,    lambda g: (0, 0)),
        ],
        out_specs=pl.BlockSpec((None, Bp, gp), lambda g: (g, 0, 0)),
    )

    out = pl.pallas_call(
        kernel,
        out_shape=jax.ShapeDtypeStruct((G, Bp, gp), jnp.float32),
        grid_spec=grid_spec,
        compiler_params=pltpu.CompilerParams(
            dimension_semantics=("parallel",)),   # groups independent -> megacore
    )(xc, pp["wcat"], pp["g1"], pp["beta1"],
      pp["w2"], pp["g2"], pp["beta2"], pp["w3"], pp["b3"])

    out = out[:, :B, :gdim].reshape(G, B, output_dim, state_dim)
    if squeeze_group:
        out = out[0]
    return out


if __name__ == "__main__":
    # Small, module-consistent shapes.
    batch = 8
    output_dim = 4
    hidden_dim = 32
    state_dim = 8
    vocab_size = 16
    embed_size = 16

    key = jax.random.PRNGKey(0)
    k_params, k_sym, k_goal = jax.random.split(key, 3)

    params = init_params(k_params, output_dim, hidden_dim, state_dim,
                         vocab_size, embed_size)
    prepped = prepare_params(params, vocab_size)

    # input: (batch, vocab_size) one-hot rows (uttered symbols)
    sym_ids = jax.random.randint(k_sym, (batch,), 0, vocab_size)
    one_hot_input = jax.nn.one_hot(sym_ids, vocab_size, dtype=jnp.float32)
    # goal_states: (batch, state_dim), digits in [0, output_dim)
    goal_states = jax.random.randint(k_goal, (batch, state_dim), 0, output_dim)

    # 1) Plain module-style call (single batch -> grid of 1).
    out = outside_state_forward(prepped, one_hot_input, goal_states,
                                output_dim=output_dim, state_dim=state_dim)
    out = jax.block_until_ready(out)
    assert out.shape == (batch, output_dim, state_dim)
    assert bool(jnp.all(jnp.isfinite(out)))

    # 2) Grouped call: 4 independent batches in one launch (weights resident
    #    in VMEM across grid steps; BN stats per group).
    G = 4
    oh_g = jnp.broadcast_to(one_hot_input, (G, batch, vocab_size))
    gs_g = jnp.broadcast_to(goal_states, (G, batch, state_dim))
    out_g = outside_state_forward(prepped, oh_g, gs_g,
                                  output_dim=output_dim, state_dim=state_dim)
    out_g = jax.block_until_ready(out_g)
    assert out_g.shape == (G, batch, output_dim, state_dim)
    assert bool(jnp.all(jnp.isfinite(out_g)))
    # Each group saw identical data -> results must match the single-batch call.
    assert bool(jnp.allclose(out_g[0], out, atol=1e-5))
    assert bool(jnp.allclose(out_g[3], out, atol=1e-5))

    print("KERNEL_OK")
</pallas_src>

<mosaic_0001>
module attributes {stable_mosaic.version = 11 : i64} {
  func.func @outside_state_kernel(%arg0: i32, %arg1: memref<1x8x128xbf16, #tpu.memory_space<vmem>>, %arg2: memref<128x128xbf16, #tpu.memory_space<vmem>>, %arg3: memref<1x128xf32, #tpu.memory_space<vmem>>, %arg4: memref<1x128xf32, #tpu.memory_space<vmem>>, %arg5: memref<128x128xbf16, #tpu.memory_space<vmem>>, %arg6: memref<1x128xf32, #tpu.memory_space<vmem>>, %arg7: memref<1x128xf32, #tpu.memory_space<vmem>>, %arg8: memref<128x128xbf16, #tpu.memory_space<vmem>>, %arg9: memref<1x128xf32, #tpu.memory_space<vmem>>, %arg10: memref<1x8x128xf32, #tpu.memory_space<vmem>>) attributes {dimension_semantics = [#tpu.dimension_semantics<parallel>], iteration_bounds = array<i64: 1>, scalar_prefetch = 0 : i64, scratch_operands = 0 : i64, tpu.core_type = #tpu.core_type<tc>, window_params = [{transform_indices = @transform_0, window_bounds = array<i64: 1, 8, 128>}, {pipeline_mode = #tpu.pipeline_mode<synchronous>, transform_indices = @transform_1, window_bounds = array<i64: 128, 128>}, {pipeline_mode = #tpu.pipeline_mode<synchronous>, transform_indices = @transform_2, window_bounds = array<i64: 1, 128>}, {pipeline_mode = #tpu.pipeline_mode<synchronous>, transform_indices = @transform_3, window_bounds = array<i64: 1, 128>}, {pipeline_mode = #tpu.pipeline_mode<synchronous>, transform_indices = @transform_4, window_bounds = array<i64: 128, 128>}, {pipeline_mode = #tpu.pipeline_mode<synchronous>, transform_indices = @transform_5, window_bounds = array<i64: 1, 128>}, {pipeline_mode = #tpu.pipeline_mode<synchronous>, transform_indices = @transform_6, window_bounds = array<i64: 1, 128>}, {pipeline_mode = #tpu.pipeline_mode<synchronous>, transform_indices = @transform_7, window_bounds = array<i64: 128, 128>}, {pipeline_mode = #tpu.pipeline_mode<synchronous>, transform_indices = @transform_8, window_bounds = array<i64: 1, 128>}, {transform_indices = @transform_9, window_bounds = array<i64: 1, 8, 128>}]} {
    %c0 = arith.constant 0 : index
    %c0_0 = arith.constant 0 : index
    %c0_1 = arith.constant 0 : index
    %0 = vector.load %arg1[%c0, %c0_0, %c0_1] : memref<1x8x128xbf16, #tpu.memory_space<vmem>>, vector<1x8x128xbf16>
    %1 = vector.shape_cast %0 : vector<1x8x128xbf16> to vector<8x128xbf16>
    %c0_2 = arith.constant 0 : index
    %c0_3 = arith.constant 0 : index
    %2 = vector.load %arg2[%c0_2, %c0_3] : memref<128x128xbf16, #tpu.memory_space<vmem>>, vector<128x128xbf16>
    %cst = arith.constant dense<0.000000e+00> : vector<8x128xf32>
    %3 = tpu.matmul %1, %2, %cst {dimension_numbers = #tpu.dot_dimension_numbers<[1], [0], [0], [1], [0, 0, 1, 1], [], []>} : vector<8x128xbf16>, vector<128x128xbf16>, vector<8x128xf32> -> vector<8x128xf32>
    %cst_4 = arith.constant dense<0.000000e+00> : vector<128xf32>
    %4 = vector.multi_reduction <add>, %3, %cst_4 [0] : vector<8x128xf32> to vector<128xf32>
    %5 = vector.shape_cast %4 : vector<128xf32> to vector<1x128xf32>
    %cst_5 = arith.constant 1.250000e-01 : f32
    %6 = vector.broadcast %cst_5 : f32 to vector<1x128xf32>
    %7 = arith.mulf %5, %6 : vector<1x128xf32>
    %8 = arith.mulf %3, %3 : vector<8x128xf32>
    %cst_6 = arith.constant dense<0.000000e+00> : vector<128xf32>
    %9 = vector.multi_reduction <add>, %8, %cst_6 [0] : vector<8x128xf32> to vector<128xf32>
    %10 = vector.shape_cast %9 : vector<128xf32> to vector<1x128xf32>
    %cst_7 = arith.constant 1.250000e-01 : f32
    %11 = vector.broadcast %cst_7 : f32 to vector<1x128xf32>
    %12 = arith.mulf %10, %11 : vector<1x128xf32>
    %13 = arith.mulf %7, %7 : vector<1x128xf32>
    %14 = arith.subf %12, %13 : vector<1x128xf32>
    %cst_8 = arith.constant 0.000000e+00 : f32
    %15 = vector.broadcast %cst_8 : f32 to vector<1x128xf32>
    %16 = arith.maximumf %14, %15 : vector<1x128xf32>
    %c0_9 = arith.constant 0 : index
    %c0_10 = arith.constant 0 : index
    %17 = vector.load %arg3[%c0_9, %c0_10] : memref<1x128xf32, #tpu.memory_space<vmem>>, vector<1x128xf32>
    %cst_11 = arith.constant 9.99999974E-6 : f32
    %18 = vector.broadcast %cst_11 : f32 to vector<1x128xf32>
    %19 = arith.addf %16, %18 : vector<1x128xf32>
    %20 = math.rsqrt %19 : vector<1x128xf32>
    %21 = arith.mulf %17, %20 : vector<1x128xf32>
    %c0_12 = arith.constant 0 : index
    %c0_13 = arith.constant 0 : index
    %22 = vector.load %arg4[%c0_12, %c0_13] : memref<1x128xf32, #tpu.memory_space<vmem>>, vector<1x128xf32>
    %23 = arith.mulf %7, %21 : vector<1x128xf32>
    %24 = arith.subf %22, %23 : vector<1x128xf32>
    %25 = vector.broadcast %21 : vector<1x128xf32> to vector<8x128xf32>
    %26 = arith.mulf %3, %25 : vector<8x128xf32>
    %27 = vector.broadcast %24 : vector<1x128xf32> to vector<8x128xf32>
    %28 = arith.addf %26, %27 : vector<8x128xf32>
    %cst_14 = arith.constant 0.000000e+00 : f32
    %29 = vector.broadcast %cst_14 : f32 to vector<8x128xf32>
    %30 = arith.maximumf %28, %29 : vector<8x128xf32>
    %31 = arith.truncf %30 : vector<8x128xf32> to vector<8x128xbf16>
    %c0_15 = arith.constant 0 : index
    %c0_16 = arith.constant 0 : index
    %32 = vector.load %arg5[%c0_15, %c0_16] : memref<128x128xbf16, #tpu.memory_space<vmem>>, vector<128x128xbf16>
    %cst_17 = arith.constant dense<0.000000e+00> : vector<8x128xf32>
    %33 = tpu.matmul %31, %32, %cst_17 {dimension_numbers = #tpu.dot_dimension_numbers<[1], [0], [0], [1], [0, 0, 1, 1], [], []>} : vector<8x128xbf16>, vector<128x128xbf16>, vector<8x128xf32> -> vector<8x128xf32>
    %cst_18 = arith.constant dense<0.000000e+00> : vector<128xf32>
    %34 = vector.multi_reduction <add>, %33, %cst_18 [0] : vector<8x128xf32> to vector<128xf32>
    %35 = vector.shape_cast %34 : vector<128xf32> to vector<1x128xf32>
    %cst_19 = arith.constant 1.250000e-01 : f32
    %36 = vector.broadcast %cst_19 : f32 to vector<1x128xf32>
    %37 = arith.mulf %35, %36 : vector<1x128xf32>
    %38 = arith.mulf %33, %33 : vector<8x128xf32>
    %cst_20 = arith.constant dense<0.000000e+00> : vector<128xf32>
    %39 = vector.multi_reduction <add>, %38, %cst_20 [0] : vector<8x128xf32> to vector<128xf32>
    %40 = vector.shape_cast %39 : vector<128xf32> to vector<1x128xf32>
    %cst_21 = arith.constant 1.250000e-01 : f32
    %41 = vector.broadcast %cst_21 : f32 to vector<1x128xf32>
    %42 = arith.mulf %40, %41 : vector<1x128xf32>
    %43 = arith.mulf %37, %37 : vector<1x128xf32>
    %44 = arith.subf %42, %43 : vector<1x128xf32>
    %cst_22 = arith.constant 0.000000e+00 : f32
    %45 = vector.broadcast %cst_22 : f32 to vector<1x128xf32>
    %46 = arith.maximumf %44, %45 : vector<1x128xf32>
    %c0_23 = arith.constant 0 : index
    %c0_24 = arith.constant 0 : index
    %47 = vector.load %arg6[%c0_23, %c0_24] : memref<1x128xf32, #tpu.memory_space<vmem>>, vector<1x128xf32>
    %cst_25 = arith.constant 9.99999974E-6 : f32
    %48 = vector.broadcast %cst_25 : f32 to vector<1x128xf32>
    %49 = arith.addf %46, %48 : vector<1x128xf32>
    %50 = math.rsqrt %49 : vector<1x128xf32>
    %51 = arith.mulf %47, %50 : vector<1x128xf32>
    %c0_26 = arith.constant 0 : index
    %c0_27 = arith.constant 0 : index
    %52 = vector.load %arg7[%c0_26, %c0_27] : memref<1x128xf32, #tpu.memory_space<vmem>>, vector<1x128xf32>
    %53 = arith.mulf %37, %51 : vector<1x128xf32>
    %54 = arith.subf %52, %53 : vector<1x128xf32>
    %55 = vector.broadcast %51 : vector<1x128xf32> to vector<8x128xf32>
    %56 = arith.mulf %33, %55 : vector<8x128xf32>
    %57 = vector.broadcast %54 : vector<1x128xf32> to vector<8x128xf32>
    %58 = arith.addf %56, %57 : vector<8x128xf32>
    %cst_28 = arith.constant 0.000000e+00 : f32
    %59 = vector.broadcast %cst_28 : f32 to vector<8x128xf32>
    %60 = arith.maximumf %58, %59 : vector<8x128xf32>
    %61 = arith.truncf %60 : vector<8x128xf32> to vector<8x128xbf16>
    %c0_29 = arith.constant 0 : index
    %c0_30 = arith.constant 0 : index
    %62 = vector.load %arg8[%c0_29, %c0_30] : memref<128x128xbf16, #tpu.memory_space<vmem>>, vector<128x128xbf16>
    %cst_31 = arith.constant dense<0.000000e+00> : vector<8x128xf32>
    %63 = tpu.matmul %61, %62, %cst_31 {dimension_numbers = #tpu.dot_dimension_numbers<[1], [0], [0], [1], [0, 0, 1, 1], [], []>} : vector<8x128xbf16>, vector<128x128xbf16>, vector<8x128xf32> -> vector<8x128xf32>
    %c0_32 = arith.constant 0 : index
    %c0_33 = arith.constant 0 : index
    %64 = vector.load %arg9[%c0_32, %c0_33] : memref<1x128xf32, #tpu.memory_space<vmem>>, vector<1x128xf32>
    %65 = vector.broadcast %64 : vector<1x128xf32> to vector<8x128xf32>
    %66 = arith.addf %63, %65 : vector<8x128xf32>
    %c0_34 = arith.constant 0 : index
    %c0_35 = arith.constant 0 : index
    %c0_36 = arith.constant 0 : index
    %67 = vector.load %arg10[%c0_34, %c0_35, %c0_36] : memref<1x8x128xf32, #tpu.memory_space<vmem>>, vector<1x8x128xf32>
    %68 = vector.shape_cast %67 : vector<1x8x128xf32> to vector<8x128xf32>
    %69 = vector.shape_cast %66 : vector<8x128xf32> to vector<1x8x128xf32>
    tpu.vector_store %arg10[%c0_34, %c0_35, %c0_36], %69 {strides = array<i32>} : memref<1x8x128xf32, #tpu.memory_space<vmem>>, vector<1x8x128xf32>,
    return
  }
  func.func @transform_0(%arg0: i32) -> (i32, i32, i32) {
    %c0_i32 = arith.constant 0 : i32
    %c0_i32_0 = arith.constant 0 : i32
    %c0_i32_1 = arith.constant 0 : i32
    return %arg0, %c0_i32, %c0_i32_0 : i32, i32, i32
  }
  func.func @transform_1(%arg0: i32) -> (i32, i32) {
    %c0_i32 = arith.constant 0 : i32
    %c0_i32_0 = arith.constant 0 : i32
    %c0_i32_1 = arith.constant 0 : i32
    return %c0_i32, %c0_i32_0 : i32, i32
  }
  func.func @transform_2(%arg0: i32) -> (i32, i32) {
    %c0_i32 = arith.constant 0 : i32
    %c0_i32_0 = arith.constant 0 : i32
    %c0_i32_1 = arith.constant 0 : i32
    return %c0_i32, %c0_i32_0 : i32, i32
  }
  func.func @transform_3(%arg0: i32) -> (i32, i32) {
    %c0_i32 = arith.constant 0 : i32
    %c0_i32_0 = arith.constant 0 : i32
    %c0_i32_1 = arith.constant 0 : i32
    return %c0_i32, %c0_i32_0 : i32, i32
  }
  func.func @transform_4(%arg0: i32) -> (i32, i32) {
    %c0_i32 = arith.constant 0 : i32
    %c0_i32_0 = arith.constant 0 : i32
    %c0_i32_1 = arith.constant 0 : i32
    return %c0_i32, %c0_i32_0 : i32, i32
  }
  func.func @transform_5(%arg0: i32) -> (i32, i32) {
    %c0_i32 = arith.constant 0 : i32
    %c0_i32_0 = arith.constant 0 : i32
    %c0_i32_1 = arith.constant 0 : i32
    return %c0_i32, %c0_i32_0 : i32, i32
  }
  func.func @transform_6(%arg0: i32) -> (i32, i32) {
    %c0_i32 = arith.constant 0 : i32
    %c0_i32_0 = arith.constant 0 : i32
    %c0_i32_1 = arith.constant 0 : i32
    return %c0_i32, %c0_i32_0 : i32, i32
  }
  func.func @transform_7(%arg0: i32) -> (i32, i32) {
    %c0_i32 = arith.constant 0 : i32
    %c0_i32_0 = arith.constant 0 : i32
    %c0_i32_1 = arith.constant 0 : i32
    return %c0_i32, %c0_i32_0 : i32, i32
  }
  func.func @transform_8(%arg0: i32) -> (i32, i32) {
    %c0_i32 = arith.constant 0 : i32
    %c0_i32_0 = arith.constant 0 : i32
    %c0_i32_1 = arith.constant 0 : i32
    return %c0_i32, %c0_i32_0 : i32, i32
  }
  func.func @transform_9(%arg0: i32) -> (i32, i32, i32) {
    %c0_i32 = arith.constant 0 : i32
    %c0_i32_0 = arith.constant 0 : i32
    %c0_i32_1 = arith.constant 0 : i32
    return %arg0, %c0_i32, %c0_i32_0 : i32, i32, i32
  }
}

</mosaic_0001>

<bundles_post_ra>
// kernel: outside_state_forward.1
= control target key start
LH: loop header
LB: loop body
LE: loop exit
PB: predicated region body
PF: predicated region fallthrough
CT: control target
= control target key end

     0   :  { %14 = vsyncpa [#allocation3], 0  ;;  %s622_s30 = smov [#allocation2]   ;;  %s785_s0 = inlined_call_operand.vmem [shape: bf16[1,8,128], index: 0, kind: input, shape index: {}]   ;;  %s786_s1 = inlined_call_operand.vmem [shape: bf16[128,128], index: 1, kind: input, shape index: {}]   ;;  %s787_s2 = inlined_call_operand.vmem [shape: f32[1,128], index: 2, kind: input, shape index: {}]   ;;  %s788_s3 = inlined_call_operand.vmem [shape: f32[1,128], index: 3, kind: input, shape index: {}]   ;;  %s789_s4 = inlined_call_operand.vmem [shape: bf16[128,128], index: 4, kind: input, shape index: {}]   ;;  %s790_s5 = inlined_call_operand.vmem [shape: f32[1,128], index: 5, kind: input, shape index: {}]   ;;  %s791_s6 = inlined_call_operand.vmem [shape: f32[1,128], index: 6, kind: input, shape index: {}]   ;;  %s792_s7 = inlined_call_operand.hbm [shape: bf16[128,128], index: 7, kind: input, shape index: {}]   ;;  %s793_s8 = inlined_call_operand.vmem [shape: f32[1,128], index: 8, kind: input, shape index: {}]   ;;  %s794_s9 = inlined_call_operand.vmem [shape: f32[1,8,128], index: 9, kind: output, shape index: {}]  }
   0x1   :  { %s34_s10 = sshll.u32 %s622_s30, 4  ;;  %s35_s10 = int_to_ptr.vmem [resolvable:$true] %s34_s10 }
   0x2   :  { %s608_s11 = scalar_lea.vmem %s35_s10, 1024  ;;  %p613_p1 = scmp.lt.s32.totalorder %s35_s10, %s35_s10 }
   0x3   :  { %p609_p0 = scmp.ne.s32.totalorder %s35_s10, %s608_s11  ;;  %p614_p2 = scmp.lt.s32.totalorder %s608_s11, %s608_s11 }
   0x5   :  { %p615_p3 = por %p614_p2, %p613_p1 }
   0x7   :  { %p616_p4 = pnand %p615_p3, %p609_p0 }
   0x9   :  { %619 = shalt.err (!%p616_p4)
}
   0xa   :  { %s623_s12 = smov 64   ;;  %s624_s13 = smov 4  }
   0xb   :  { %40 = dma.hbm_to_vmem [thread:$0]  %s792_s7, 1024, %s35_s10, [#allocation3], %s623_s12, %s623_s12, %s624_s13  }
   0xc   :  { %620 = dma.done.wait [#allocation3], 1024  }
   0xd   :  { %621 = vsyncadd [#allocation3], 4294966272  ;;  %v625_v0 = vmov 0.0   ;;  %vm626_vm0 = vmmov 0   ;;  %v572_v1 = vld [vmem:[%s786_s1 + $0x38] sm:$0xff]   ;;  %v573_v2 = vld [vmem:[%s786_s1 + $0x30] sm:$0xff]   ;;  %v178_v41 = vlaneseq }
   0xe   :  { %507 = vmatprep.subr.bf16.mxu0 %v625_v0  ;;  %523 = vmatprep.mubr.msk.bf16.mxu0 %vm626_vm0, %v625_v0  ;;  %v574_v3 = vld [vmem:[%s786_s1 + $0x28] sm:$0xff]   ;;  %v575_v4 = vld [vmem:[%s786_s1 + $0x20] sm:$0xff]   ;;  %v576_v5 = vld [vmem:[%s786_s1 + $0x18] sm:$0xff]  }
   0xf   :  { %527 = vmatprep.subr.bf16.mxu1 %v625_v0  ;;  %543 = vmatprep.mubr.msk.bf16.mxu1 %vm626_vm0, %v625_v0  ;;  %v577_v6 = vld [vmem:[%s786_s1 + $0x10] sm:$0xff]   ;;  %v578_v7 = vld [vmem:[%s786_s1 + $0x8] sm:$0xff]   ;;  %v579_v8 = vld [vmem:[%s786_s1] sm:$0xff]   ;;  %v179_v42 = vshrl.u32 %v178_v41, 7 }
  0x10   :  { %508 = vmatpush3.bf16.msra.mxu0 %v572_v1  ;;  %v47_v9 = vld [vmem:[%s785_s0] sm:$0xf]  ;;  %v580_v10 = vld [vmem:[%s789_s4 + $0x38] sm:$0xff]   ;;  %v581_v11 = vld [vmem:[%s789_s4 + $0x30] sm:$0xff]  }
  0x11   :  { %509 = vmatprep.subr.bf16.mxu0 %v625_v0  ;;  %528 = vmatpush3.bf16.msra.mxu1 %v580_v10  ;;  %v582_v12 = vld [vmem:[%s789_s4 + $0x28] sm:$0xff]   ;;  %v583_v13 = vld [vmem:[%s789_s4 + $0x20] sm:$0xff]   ;;  %v584_v14 = vld [vmem:[%s789_s4 + $0x18] sm:$0xff]   ;;  %v757_v44 = vsub.s32 0, %v179_v42 }
  0x12   :  { %529 = vmatprep.subr.bf16.mxu1 %v625_v0  ;;  %v585_v15 = vld [vmem:[%s789_s4 + $0x10] sm:$0xff]   ;;  %v586_v16 = vld [vmem:[%s789_s4 + $0x8] sm:$0xff]   ;;  %v587_v17 = vld [vmem:[%s789_s4] sm:$0xff]  }
  0x13   :  { %v170_v43 = vld [vmem:[%s787_s2] sm:$0x1]  ;;  %v588_v56 = vld [vmem:[#allocation2 + $0x38] sm:$0xff]   ;;  %v589_v57 = vld [vmem:[#allocation2 + $0x30] sm:$0xff]  }
  0x14   :  { %510 = vmatpush3.bf16.msra.mxu0 %v573_v2  ;;  %v174_v47 = vld [vmem:[%s788_s3] sm:$0x1]  ;;  %v590_v58 = vld [vmem:[#allocation2 + $0x28] sm:$0xff]   ;;  %v592_v60 = vld [vmem:[#allocation2 + $0x18] sm:$0xff]  }
  0x15   :  { %511 = vmatprep.subr.bf16.mxu0 %v625_v0  ;;  %530 = vmatpush3.bf16.msra.mxu1 %v581_v11  ;;  %v591_v59 = vld [vmem:[#allocation2 + $0x20] sm:$0xff]   ;;  %v593_v61 = vld [vmem:[#allocation2 + $0x10] sm:$0xff]   ;;  %v594_v62 = vld [vmem:[#allocation2 + $0x8] sm:$0xff]  }
  0x16   :  { %531 = vmatprep.subr.bf16.mxu1 %v625_v0  ;;  %v595_v63 = vld [vmem:[#allocation2] sm:$0xff]  }
  0x18   :  { %512 = vmatpush3.bf16.msra.mxu0 %v574_v3 }
  0x19   :  { %513 = vmatprep.subr.bf16.mxu0 %v625_v0  ;;  %532 = vmatpush3.bf16.msra.mxu1 %v582_v12 }
  0x1a   :  { %533 = vmatprep.subr.bf16.mxu1 %v625_v0 }
  0x1c   :  { %514 = vmatpush3.bf16.msra.mxu0 %v575_v4 }
  0x1d   :  { %515 = vmatprep.subr.bf16.mxu0 %v625_v0  ;;  %534 = vmatpush3.bf16.msra.mxu1 %v583_v13 }
  0x1e   :  { %535 = vmatprep.subr.bf16.mxu1 %v625_v0 }
  0x20   :  { %516 = vmatpush3.bf16.msra.mxu0 %v576_v5 }
  0x21   :  { %517 = vmatprep.subr.bf16.mxu0 %v625_v0  ;;  %536 = vmatpush3.bf16.msra.mxu1 %v584_v14 }
  0x22   :  { %537 = vmatprep.subr.bf16.mxu1 %v625_v0 }
  0x24   :  { %518 = vmatpush3.bf16.msra.mxu0 %v577_v6 }
  0x25   :  { %519 = vmatprep.subr.bf16.mxu0 %v625_v0  ;;  %538 = vmatpush3.bf16.msra.mxu1 %v585_v15 }
  0x26   :  { %539 = vmatprep.subr.bf16.mxu1 %v625_v0 }
  0x28   :  { %520 = vmatpush3.bf16.msra.mxu0 %v578_v7 }
  0x29   :  { %521 = vmatprep.subr.bf16.mxu0 %v625_v0  ;;  %540 = vmatpush3.bf16.msra.mxu1 %v586_v16 }
  0x2a   :  { %541 = vmatprep.subr.bf16.mxu1 %v625_v0 }
  0x2c   :  { %522 = vmatpush3.bf16.msra.mxu0 %v579_v8 }
  0x2d   :  { %547 = vmatprep.subr.bf16.mxu0 %v625_v0  ;;  %542 = vmatpush3.bf16.msra.mxu1 %v587_v17 }
  0x2f   :  { %524 = vmatmul.mubr.bf16.vlgmr.msra.gmra.mxu0 %v47_v9 }
  0x30   :  { %563 = vmatprep.mubr.msk.bf16.mxu0 %vm626_vm0, %v625_v0  ;;  %548 = vmatpush3.bf16.msra.mxu0 %v588_v56 }
  0x31   :  { %549 = vmatprep.subr.bf16.mxu0 %v625_v0 }
  0x34   :  { %550 = vmatpush3.bf16.msra.mxu0 %v589_v57 }
  0x35   :  { %551 = vmatprep.subr.bf16.mxu0 %v625_v0 }
  0x38   :  { %552 = vmatpush3.bf16.msra.mxu0 %v590_v58 }
  0x39   :  { %553 = vmatprep.subr.bf16.mxu0 %v625_v0 }
  0x3c   :  { %554 = vmatpush3.bf16.msra.mxu0 %v591_v59 }
  0x3d   :  { %555 = vmatprep.subr.bf16.mxu0 %v625_v0 }
  0x40   :  { %556 = vmatpush3.bf16.msra.mxu0 %v592_v60 }
  0x41   :  { %557 = vmatprep.subr.bf16.mxu0 %v625_v0 }
  0x44   :  { %558 = vmatpush3.bf16.msra.mxu0 %v593_v61 }
  0x45   :  { %559 = vmatprep.subr.bf16.mxu0 %v625_v0 }
  0x48   :  { %560 = vmatpush3.bf16.msra.mxu0 %v594_v62 }
  0x49   :  { %561 = vmatprep.subr.bf16.mxu0 %v625_v0 }
  0x4c   :  { %562 = vmatpush3.bf16.msra.mxu0 %v595_v63 }
  0xef   :  { %v146_v18 = vpop.f32.mrf.mxu0 }
  0xf0   :  { %v152_v19 = vrot.slane %v146_v18, 4  ;;  %v159_v20 = vmul.f32 %v146_v18, %v146_v18 }
  0xf1   :  { %v525_v21 = vpop.f32.mrf.mxu0 }
  0xf2   :  { %v153_v22 = vadd.f32 %v152_v19, %v146_v18  ;;  %v160_v23 = vrot.slane %v159_v20, 4 }
  0xf3   :  { %v149_v24 = vpop.f32.mrf.mxu0 }
  0xf4   :  { %v154_v25 = vrot.slane %v153_v22, 2  ;;  %v161_v26 = vadd.f32 %v160_v23, %v159_v20  ;;  %v315_v23 = vld [vmem:[%s790_s5] sm:$0x1] }
  0xf5   :  { %v526_v27 = vpop.f32.mrf.mxu0 }
  0xf6   :  { %v155_v28 = vadd.f32 %v154_v25, %v153_v22  ;;  %v162_v29 = vrot.slane %v161_v26, 2 }
  0xf8   :  { %v156_v30 = vrot.slane %v155_v28, 1  ;;  %v163_v31 = vadd.f32 %v162_v29, %v161_v26  ;;  %v319_v26 = vld [vmem:[%s791_s6] sm:$0x1] }
  0xfa   :  { %v157_v32 = vadd.f32 %v156_v30, %v155_v28  ;;  %v164_v33 = vrot.slane %v163_v31, 1 }
  0xfc   :  { %v158_v34 = vmul.f32 0.125, %v157_v32  ;;  %v165_v35 = vadd.f32 %v164_v33, %v163_v31 }
  0xfe   :  { %v166_v36 = vmul.f32 0.125, %v165_v35  ;;  %v167_v37 = vmul.f32 %v158_v34, %v158_v34  ;;  %v471_v35 = vld [vmem:[%s793_s8] ss:$0 sm:$0xff] }
 0x100   :  { %v168_v38 = vsub.f32 %v166_v36, %v167_v37 }
 0x102   :  { %v169_v39 = vmax.f32 %v168_v38, 0.0 }
 0x104   :  { %v171_v40 = vadd.f32 1e-05, %v169_v39 }
 0x106   :  { %596 = vrsqrt.f32 %v171_v40 }
 0x113   :  { %v597_v45 = vpop.eup %596 }
 0x114   :  { %v173_v46 = vmul.f32 %v597_v45, %v170_v43 }
 0x116   :  { %v181_v48 = vrot.slane %v173_v46, %v757_v44  ;;  %v175_v49 = vmul.f32 %v173_v46, %v158_v34 }
 0x118   :  { %v176_v50 = vsub.f32 %v174_v47, %v175_v49  ;;  %v183_v51 = vmul.f32 %v181_v48, %v146_v18 }
 0x11a   :  { %v188_v52 = vrot.slane %v176_v50, %v757_v44 }
 0x11c   :  { %v190_v53 = vadd.f32 %v188_v52, %v183_v51 }
 0x11e   :  { %v191_v54 = vmax.f32 %v190_v53, 0.0 }
 0x120   :  { %v192_v55 = vpack.c.bf16 %v191_v54, %v191_v54 }
 0x122   :  { %544 = vmatmul.mubr.bf16.vlgmr.msra.gmra.mxu1 %v192_v55 }
 0x1e2   :  { %v291_v1 = vpop.f32.mrf.mxu1 }
 0x1e3   :  { %v297_v2 = vrot.slane %v291_v1, 4  ;;  %v304_v3 = vmul.f32 %v291_v1, %v291_v1 }
 0x1e4   :  { %v545_v4 = vpop.f32.mrf.mxu1 }
 0x1e5   :  { %v298_v5 = vadd.f32 %v297_v2, %v291_v1  ;;  %v305_v6 = vrot.slane %v304_v3, 4 }
 0x1e6   :  { %v294_v7 = vpop.f32.mrf.mxu1 }
 0x1e7   :  { %v299_v8 = vrot.slane %v298_v5, 2  ;;  %v306_v9 = vadd.f32 %v305_v6, %v304_v3 }
 0x1e8   :  { %v546_v10 = vpop.f32.mrf.mxu1 }
 0x1e9   :  { %v300_v11 = vadd.f32 %v299_v8, %v298_v5  ;;  %v307_v12 = vrot.slane %v306_v9, 2 }
 0x1eb   :  { %v301_v13 = vrot.slane %v300_v11, 1  ;;  %v308_v14 = vadd.f32 %v307_v12, %v306_v9 }
 0x1ed   :  { %v302_v15 = vadd.f32 %v301_v13, %v300_v11  ;;  %v309_v16 = vrot.slane %v308_v14, 1 }
 0x1ef   :  { %v303_v17 = vmul.f32 0.125, %v302_v15  ;;  %v310_v0 = vadd.f32 %v309_v16, %v308_v14 }
 0x1f1   :  { %v311_v18 = vmul.f32 0.125, %v310_v0  ;;  %v312_v19 = vmul.f32 %v303_v17, %v303_v17 }
 0x1f3   :  { %v313_v20 = vsub.f32 %v311_v18, %v312_v19 }
 0x1f5   :  { %v314_v21 = vmax.f32 %v313_v20, 0.0 }
 0x1f7   :  { %v316_v22 = vadd.f32 1e-05, %v314_v21 }
 0x1f9   :  { %598 = vrsqrt.f32 %v316_v22 }
 0x206   :  { %v599_v24 = vpop.eup %598 }
 0x207   :  { %v318_v25 = vmul.f32 %v599_v24, %v315_v23 }
 0x209   :  { %v320_v27 = vmul.f32 %v318_v25, %v303_v17  ;;  %v326_v28 = vrot.slane %v318_v25, %v757_v44 }
 0x20b   :  { %v321_v29 = vsub.f32 %v319_v26, %v320_v27  ;;  %v328_v30 = vmul.f32 %v326_v28, %v291_v1 }
 0x20d   :  { %v333_v31 = vrot.slane %v321_v29, %v757_v44 }
 0x20f   :  { %v335_v32 = vadd.f32 %v333_v31, %v328_v30 }
 0x211   :  { %v336_v33 = vmax.f32 %v335_v32, 0.0 }
 0x213   :  { %v337_v34 = vpack.c.bf16 %v336_v33, %v336_v33 }
 0x215   :  { %564 = vmatmul.mubr.bf16.vlgmr.msra.gmra.mxu0 %v337_v34 }
 0x2d5   :  { %v443_v36 = vpop.f32.mrf.mxu0 }
 0x2d6   :  { %v444_v37 = vadd.f32 %v471_v35, %v443_v36 }
 0x2d7   :  { %v565_v38 = vpop.f32.mrf.mxu0 }
 0x2d8   :  { %449 = vst [vmem:[%s794_s9] sm:$0xff] %v444_v37 }
 0x2d9   :  { %v446_v39 = vpop.f32.mrf.mxu0 }
 0x2db   :  { %v566_v40 = vpop.f32.mrf.mxu0 }
 0x2dc   :  { %454 = vsyncpa [#allocation3], 1 }

</bundles_post_ra>
